<compile_context>
chip_gen: v7x
topology: tpu7x:2x2x1
jax: 0.10.0
libtpu: 0.0.40
codegen_flags: <defaults>
</compile_context>

<pallas_src>
import jax
import jax.numpy as jnp
from jax.experimental import pallas as pl
from jax.experimental.pallas import tpu as pltpu

T_KD = 4.0
_TARGET_BLOCK_BYTES = 4 * 1024 * 1024  # ~4 MiB of each input per grid step


def _round_up(x, m):
    return ((x + m - 1) // m) * m


def _vmem_capacity_bytes():
    try:
        cap = getattr(pltpu.get_tpu_info(), "vmem_capacity_bytes", None)
        if cap:
            return int(cap)
    except Exception:
        pass
    return 64 * 1024 * 1024  # conservative fallback (v7x per-core VMEM)


def _num_tensorcores():
    try:
        info = pltpu.get_tpu_info()
        for attr in ("num_tensorcores", "num_cores", "core_count",
                     "tensorcore_count"):
            v = getattr(info, attr, None)
            if v:
                return int(v)
    except Exception:
        pass
    return 2  # conservative fallback: assume a 2-TC chip (v7x) so grid >= 2


def _choose_tile_rows(n, c, itemsize, vmem_limit_bytes, num_cores):
    """Pick the batch tile: bytes-based DMA target, VMEM-capped, >=2 tiles on 2-TC."""
    mult = 8 if itemsize >= 4 else 16  # sublane packing: 8 for f32, 16 for bf16
    n_pad = _round_up(n, mult)

    # VMEM ceiling: 2 double-buffered input blocks + ~8 live full-tile f32
    # intermediates, with 25% headroom on the scoped limit.
    budget = (3 * vmem_limit_bytes) // 4
    bytes_per_row = c * (2 * 2 * itemsize + 8 * 4)
    tn_vmem = max(1, budget // max(bytes_per_row, 1))

    # Bandwidth target: ~4 MiB of each input per grid step (no fixed row cap).
    tn_bw = max(1, _TARGET_BLOCK_BYTES // max(c * itemsize, 1))

    tn = min(tn_vmem, tn_bw)
    tn = max(mult, (tn // mult) * mult)
    tn = min(tn, n_pad)

    # Keep >= 2 grid steps on multi-TensorCore chips so the "parallel" axis
    # actually shards across cores (v7x); negligible cost on 1-TC chips.
    if num_cores >= 2 and n_pad >= 2 * mult:
        tn = min(tn, max(mult, _round_up(n_pad // 2, mult)))

    # Prefer a tile that divides N exactly (within 2x of the target) so no
    # tile needs edge-row masking at all.
    if n % tn != 0 and n % mult == 0:
        cand = tn
        lo = max(mult, tn // 2)
        while cand >= lo:
            if n % cand == 0:
                tn = cand
                break
            cand -= mult

    return tn, mult


def _make_kernel(n_rows, tile_rows, needs_mask):
    inv_t = 1.0 / T_KD

    def kernel(ys_ref, yt_ref, out_ref):
        # All math in f32 regardless of the (possibly bf16) input dtype.
        s = ys_ref[...].astype(jnp.float32) * inv_t
        t = yt_ref[...].astype(jnp.float32) * inv_t

        # Numerically stable log-softmax pieces.
        s_shift = s - jnp.max(s, axis=1, keepdims=True)
        t_shift = t - jnp.max(t, axis=1, keepdims=True)
        exp_t = jnp.exp(t_shift)
        z_t = jnp.sum(exp_t, axis=1, keepdims=True)
        z_s = jnp.sum(jnp.exp(s_shift), axis=1, keepdims=True)

        # Per-row KL using sum_c p_t == 1:
        #   kl_row = (sum_c exp_t*(t_shift - s_shift)) / z_t - (log z_t - log z_s)
        # Avoids materializing full-tile `diff` / `p_t` temporaries.
        w_sum = jnp.sum(exp_t * (t_shift - s_shift), axis=1, keepdims=True)
        kl_row = (w_sum * pl.reciprocal(z_t, approx=False)
                  - (jnp.log(z_t) - jnp.log(z_s)))          # (tile_rows, 1)

        if needs_mask:
            # Only the cheap (tile_rows, 1) per-row vector is masked; garbage
            # in padded rows never reaches the accumulated sum.
            row = (jax.lax.broadcasted_iota(jnp.int32, kl_row.shape, 0)
                   + pl.program_id(0) * tile_rows)
            kl_row = jnp.where(row < n_rows, kl_row, 0.0)

        # Lane-dense partial-sum block; wrapper reads element [i, 0, 0].
        out_ref[...] = jnp.broadcast_to(jnp.sum(kl_row), out_ref.shape)

    return kernel


def distill_kl(y_s, y_t, *, tile_rows=None):
    """Pallas DistillKL.forward(y_s, y_t) -> scalar loss (T = 4.0).

    Accepts f32 or bf16 logits of shape (N, C).  Feeding bf16 halves HBM
    traffic (the roofline for this kernel) while all softmax/KL math is done
    in f32 inside VMEM.
    """
    assert y_s.shape == y_t.shape and y_s.ndim == 2
    n, c = y_s.shape
    itemsize = jnp.dtype(y_s.dtype).itemsize

    vmem_cap = _vmem_capacity_bytes()
    vmem_limit = int(max(32 * 1024 * 1024,
                         min(3 * vmem_cap // 4, 96 * 1024 * 1024)))

    num_cores = _num_tensorcores()
    if tile_rows is None:
        tn, _ = _choose_tile_rows(n, c, itemsize, vmem_limit, num_cores)
    else:
        mult = 8 if itemsize >= 4 else 16
        tn = max(mult, _round_up(int(tile_rows), mult))
        tn = min(tn, _round_up(n, mult))

    num_tiles = -(-n // tn)
    needs_mask = (n % tn) != 0

    # Very wide C can force the tile toward the 8/16-row minimum; a 3rd
    # pipeline buffer then hides the extra per-step DMA issue latency (only
    # requested when the deeper buffering still fits comfortably in VMEM).
    block_bytes = tn * c * itemsize
    use_triple = (block_bytes <= (1 << 20) and num_tiles >= 4 and
                  (2 * 3 * block_bytes + 8 * 4 * tn * c) <= (3 * vmem_limit) // 4)
    if use_triple:
        in_spec = pl.BlockSpec((tn, c), lambda i: (i, 0),
                               pipeline_mode=pl.Buffered(3))
    else:
        in_spec = pl.BlockSpec((tn, c), lambda i: (i, 0))

    kernel = _make_kernel(n, tn, needs_mask)

    partials = pl.pallas_call(
        kernel,
        out_shape=jax.ShapeDtypeStruct((num_tiles, 8, 128), jnp.float32),
        grid=(num_tiles,),
        in_specs=[in_spec, in_spec],
        out_specs=pl.BlockSpec((1, 8, 128), lambda i: (i, 0, 0)),
        compiler_params=pltpu.CompilerParams(
            dimension_semantics=("parallel",),
            vmem_limit_bytes=vmem_limit,
        ),
    )(y_s, y_t)

    # Tiny final reduction over per-tile partial sums (num_tiles scalars).
    return jnp.sum(partials[:, 0, 0]) * (T_KD * T_KD / n)


def _reference(y_s, y_t):
    # Pure-JAX reference for sanity check.
    log_p_s = jax.nn.log_softmax(y_s / T_KD, axis=1)
    p_t = jax.nn.softmax(y_t / T_KD, axis=1)
    log_p_t = jax.nn.log_softmax(y_t / T_KD, axis=1)
    n = y_s.shape[0]
    return jnp.sum(p_t * (log_p_t - log_p_s)) / n * (T_KD * T_KD)


if __name__ == "__main__":
    key = jax.random.PRNGKey(0)
    k1, k2, k3, k4, k5, k6 = jax.random.split(key, 6)

    # Case 1: small aligned shape, automatic tiling (exercises the >=2-tile
    # clamp for 2-TC chips when applicable).
    N, C = 16, 128
    y_s = jax.random.normal(k1, (N, C), dtype=jnp.float32)
    y_t = jax.random.normal(k2, (N, C), dtype=jnp.float32)
    loss = distill_kl(y_s, y_t)
    jax.block_until_ready(loss)
    ref = _reference(y_s, y_t)
    assert jnp.allclose(loss, ref, atol=1e-5, rtol=1e-5), (loss, ref)

    # Case 2: forced small tile -> 3 grid steps with a partial edge tile
    # (exercises the per-row edge masking path).
    N2, C2 = 20, 128
    y_s2 = jax.random.normal(k3, (N2, C2), dtype=jnp.float32)
    y_t2 = jax.random.normal(k4, (N2, C2), dtype=jnp.float32)
    loss2 = distill_kl(y_s2, y_t2, tile_rows=8)
    jax.block_until_ready(loss2)
    ref2 = _reference(y_s2, y_t2)
    assert jnp.allclose(loss2, ref2, atol=1e-5, rtol=1e-5), (loss2, ref2)

    # Case 3: bf16 ingest (halves HBM bytes); math stays f32 inside the kernel.
    N3, C3 = 32, 256
    y_s3 = jax.random.normal(k5, (N3, C3), dtype=jnp.float32).astype(jnp.bfloat16)
    y_t3 = jax.random.normal(k6, (N3, C3), dtype=jnp.float32).astype(jnp.bfloat16)
    loss3 = distill_kl(y_s3, y_t3)
    jax.block_until_ready(loss3)
    ref3 = _reference(y_s3.astype(jnp.float32), y_t3.astype(jnp.float32))
    assert jnp.allclose(loss3, ref3, atol=1e-4, rtol=1e-4), (loss3, ref3)

    print("KERNEL_OK")
</pallas_src>

<mosaic_0001>
module attributes {stable_mosaic.version = 11 : i64} {
  func.func @kernel(%arg0: i32, %arg1: memref<8x128xf32, #tpu.memory_space<vmem>>, %arg2: memref<8x128xf32, #tpu.memory_space<vmem>>, %arg3: memref<1x8x128xf32, #tpu.memory_space<vmem>>) attributes {dimension_semantics = [#tpu.dimension_semantics<parallel>], iteration_bounds = array<i64: 2>, scalar_prefetch = 0 : i64, scratch_operands = 0 : i64, tpu.core_type = #tpu.core_type<tc>, window_params = [{transform_indices = @transform_0, window_bounds = array<i64: 8, 128>}, {transform_indices = @transform_1, window_bounds = array<i64: 8, 128>}, {transform_indices = @transform_2, window_bounds = array<i64: 1, 8, 128>}]} {
    %c0 = arith.constant 0 : index
    %c0_0 = arith.constant 0 : index
    %0 = vector.load %arg1[%c0, %c0_0] : memref<8x128xf32, #tpu.memory_space<vmem>>, vector<8x128xf32>
    %cst = arith.constant 2.500000e-01 : f32
    %1 = vector.broadcast %cst : f32 to vector<8x128xf32>
    %2 = arith.mulf %0, %1 : vector<8x128xf32>
    %c0_1 = arith.constant 0 : index
    %c0_2 = arith.constant 0 : index
    %3 = vector.load %arg2[%c0_1, %c0_2] : memref<8x128xf32, #tpu.memory_space<vmem>>, vector<8x128xf32>
    %cst_3 = arith.constant 2.500000e-01 : f32
    %4 = vector.broadcast %cst_3 : f32 to vector<8x128xf32>
    %5 = arith.mulf %3, %4 : vector<8x128xf32>
    %cst_4 = arith.constant dense<0xFF800000> : vector<8xf32>
    %6 = vector.multi_reduction <maximumf>, %2, %cst_4 [1] : vector<8x128xf32> to vector<8xf32>
    %7 = vector.shape_cast %6 : vector<8xf32> to vector<8x1xf32>
    %8 = vector.broadcast %7 : vector<8x1xf32> to vector<8x128xf32>
    %9 = arith.subf %2, %8 : vector<8x128xf32>
    %cst_5 = arith.constant dense<0xFF800000> : vector<8xf32>
    %10 = vector.multi_reduction <maximumf>, %5, %cst_5 [1] : vector<8x128xf32> to vector<8xf32>
    %11 = vector.shape_cast %10 : vector<8xf32> to vector<8x1xf32>
    %12 = vector.broadcast %11 : vector<8x1xf32> to vector<8x128xf32>
    %13 = arith.subf %5, %12 : vector<8x128xf32>
    %14 = math.exp %13 : vector<8x128xf32>
    %cst_6 = arith.constant dense<0.000000e+00> : vector<8xf32>
    %15 = vector.multi_reduction <add>, %14, %cst_6 [1] : vector<8x128xf32> to vector<8xf32>
    %16 = vector.shape_cast %15 : vector<8xf32> to vector<8x1xf32>
    %17 = math.exp %9 : vector<8x128xf32>
    %cst_7 = arith.constant dense<0.000000e+00> : vector<8xf32>
    %18 = vector.multi_reduction <add>, %17, %cst_7 [1] : vector<8x128xf32> to vector<8xf32>
    %19 = vector.shape_cast %18 : vector<8xf32> to vector<8x1xf32>
    %20 = arith.subf %13, %9 : vector<8x128xf32>
    %21 = arith.mulf %14, %20 : vector<8x128xf32>
    %cst_8 = arith.constant dense<0.000000e+00> : vector<8xf32>
    %22 = vector.multi_reduction <add>, %21, %cst_8 [1] : vector<8x128xf32> to vector<8xf32>
    %23 = vector.shape_cast %22 : vector<8xf32> to vector<8x1xf32>
    %24 = tpu.reciprocal %16 : vector<8x1xf32> -> vector<8x1xf32>
    %25 = arith.mulf %23, %24 : vector<8x1xf32>
    %26 = math.log %16 : vector<8x1xf32>
    %27 = math.log %19 : vector<8x1xf32>
    %28 = arith.subf %26, %27 : vector<8x1xf32>
    %29 = arith.subf %25, %28 : vector<8x1xf32>
    %30 = vector.shape_cast %29 : vector<8x1xf32> to vector<1x8x1xf32>
    %cst_9 = arith.constant dense<0.000000e+00> : vector<1xf32>
    %31 = vector.multi_reduction <add>, %30, %cst_9 [1, 2] : vector<1x8x1xf32> to vector<1xf32>
    %32 = vector.shape_cast %31 : vector<1xf32> to vector<1x1x1xf32>
    %33 = vector.extract %32[0, 0, 0] : f32 from vector<1x1x1xf32>
    %34 = vector.broadcast %33 : f32 to vector<1x8x128xf32>
    %c0_10 = arith.constant 0 : index
    %c0_11 = arith.constant 0 : index
    %c0_12 = arith.constant 0 : index
    %35 = vector.load %arg3[%c0_10, %c0_11, %c0_12] : memref<1x8x128xf32, #tpu.memory_space<vmem>>, vector<1x8x128xf32>
    tpu.vector_store %arg3[%c0_10, %c0_11, %c0_12], %34 {strides = array<i32>} : memref<1x8x128xf32, #tpu.memory_space<vmem>>, vector<1x8x128xf32>,
    return
  }
  func.func @transform_0(%arg0: i32) -> (i32, i32) {
    %c0_i32 = arith.constant 0 : i32
    %c0_i32_0 = arith.constant 0 : i32
    return %arg0, %c0_i32 : i32, i32
  }
  func.func @transform_1(%arg0: i32) -> (i32, i32) {
    %c0_i32 = arith.constant 0 : i32
    %c0_i32_0 = arith.constant 0 : i32
    return %arg0, %c0_i32 : i32, i32
  }
  func.func @transform_2(%arg0: i32) -> (i32, i32, i32) {
    %c0_i32 = arith.constant 0 : i32
    %c0_i32_0 = arith.constant 0 : i32
    %c0_i32_1 = arith.constant 0 : i32
    return %arg0, %c0_i32, %c0_i32_0 : i32, i32, i32
  }
}

</mosaic_0001>

<bundles_post_ra>
// kernel: tpu_custom_call.1
= control target key start
LH: loop header
LB: loop body
LE: loop exit
PB: predicated region body
PF: predicated region fallthrough
CT: control target
= control target key end

     0   :  { %7 = vsyncpa [#allocation3], 0  ;;  %s788_s0 = inlined_call_operand.hbm [shape: f32[16,128], index: 0, kind: input, shape index: {}]   ;;  %s789_s1 = inlined_call_operand.hbm [shape: f32[16,128], index: 1, kind: input, shape index: {}]   ;;  %s790_s2 = inlined_call_operand.hbm [shape: f32[2,8,128], index: 2, kind: output, shape index: {}]  }
   0x1   :  { %9 = vsyncpa [#allocation3 + $0x1], 0 }
   0x2   :  { %10 = vsyncpa [#allocation6], 0 }
   0x3   :  { %12 = vsyncpa [#allocation6 + $0x1], 0 }
   0x4   :  { %13 = vsyncpa [#allocation4], 0 }
   0x5   :  { %15 = vsyncpa [#allocation4 + $0x1], 0  ;;  %s574_s9 = smov 0   ;;  %s576_s10 = smov 0  }
   0x6   :  { %s578_s11 = smov 0   ;;  %s580_s12 = smov 0  }
   0x7 LB: > { %s595_s13 = sadd.s32 4294967295, %s554_s12   ;;  %s346_s14 = sadd.s32 4294967294, %s554_s12   ;;  %s554_s12 = sphi %s580_s12, %s809_s12   ;;  %s550_s11 = sphi %s578_s11, %s808_s11   ;;  %s546_s10 = sphi %s576_s10, %s807_s10   ;;  %s542_s9 = sphi %s574_s9, %s806_s9  }
   0x8   : > { %s599_s15 = sadd.s32 1, %s554_s12   ;;  %s28_s16 = sadd.s32 1, %s550_s11 }
   0x9   : > { %s25_s17 = ssub.s32 %s554_s12, %s599_s15  ;;  %p35_p0 = scmp.ne.s32.totalorder %s550_s11, %s546_s10 }
   0xa   : > { %p26_p1 = scmp.eq.s32.totalorder %s25_s17, 0  ;;  %p36_p2 = scmp.eq.s32.totalorder %s554_s12, 0 }
   0xb   : > { %p41_p3 = scmp.ne.s32.totalorder %s546_s10, %s542_s9  ;;  %p42_p4 = scmp.eq.s32.totalorder %s595_s13, 0 }
   0xc   : > { %s611_s18 = scalar_select %p26_p1, %s550_s11, %s28_s16  }
   0xd   : > { %p613_p5 = por %p36_p2, %p35_p0  ;;  %p617_p6 = por %p42_p4, %p41_p3 }
   0xe   : > { %p91_p7 = scmp.eq.s32.totalorder %s595_s13, 1  ;;  %p97_p8 = scmp.eq.s32.totalorder %s346_s14, 1 }
   0xf   : > { %s794_s20 = scalar_select %p617_p6, 1, 0 }
  0x10   : > { %p380_p10 = scmp.lt.s32.totalorder %s554_s12, 2  ;;  %p624_p11 = por %p91_p7, %p35_p0 }
  0x11   : > { %p628_p12 = por %p97_p8, %p41_p3  ;;  %s633_s23 = sand.u32 1, %s550_s11  }
  0x12   : > { %s795_s21 = scalar_select %p624_p11, 1, 0 }
  0x13   : > { %s796_s22 = scalar_select %p628_p12, 1, 0 }
  0x14   : > { %s350_s24 = sshll.u32 %s554_s12, 7  ;;  %s349_s25 = sshll.u32 %s633_s23, 3 }
  0x15   : > { %s642_s28 = scalar_lea.hbm %s788_s0, %s350_s24  ;;  %s121_s29 = scalar_lea.vmem [#allocation2], %s349_s25 }
  0x16   : > { %s128_s30 = sshll.u32 %s121_s29, 4  ;;  %p648_p13 = pnand %p380_p10, %p613_p5  ;;  %s652_s30 = int_to_ptr.vmem [resolvable:$true] %s128_s30 }
  0x17   : > { %s118_s4 = scalar_lea.sflag [#allocation3], %s633_s23  ;;  %s424_s5 = scalar_lea.hbm %s642_s28, 128 }
  0x18   : > { %p425_p2 = scmp.ne.s32.totalorder %s642_s28, %s424_s5  ;;  %p426_p3 = pneg %p648_p13 }
  0x19   : > { %s429_s8 = scalar_lea.hbm %s788_s0, 256  ;;  %p430_p5 = scmp.lt.u32.totalorder %s642_s28, %s788_s0 }
  0x1a   : > { %p427_p4 = pnand %p426_p3, %p425_p2  ;;  %p431_p8 = scmp.lt.u32.totalorder %s429_s8, %s424_s5 }
  0x1b   : > { %p433_p9 = scmp.lt.u32.totalorder %s424_s5, %s642_s28 }
  0x1c   : > { %p428_p7 = pneg %p427_p4  ;;  %p432_p10 = por %p431_p8, %p430_p5 }
  0x1e   : > { %p434_p0 = por %p433_p9, %p432_p10 }
  0x20   : > { %p435_p1 = pnand %p434_p0, %p428_p7 }
  0x22   : > { %438 = shalt.err (!%p435_p1)
}
  0x23   : > { %s439_s17 = scalar_lea.vmem %s652_s30, 128  ;;  %s556_s19 = smov [#allocation2]  }
  0x24   : > { %p440_p2 = scmp.ne.s32.totalorder %s652_s30, %s439_s17  ;;  %s444_s26 = sshll.u32 %s556_s19, 4  ;;  %s445_s26 = int_to_ptr.vmem [resolvable:$false] %s444_s26 }
  0x25   : > { %s446_s27 = scalar_lea.vmem %s445_s26, 256  ;;  %p447_p11 = scmp.lt.s32.totalorder %s652_s30, %s445_s26 }
  0x26   : > { %p442_p4 = pnand %p440_p2, %p426_p3  ;;  %p448_p5 = scmp.lt.s32.totalorder %s446_s27, %s439_s17 }
  0x28   : > { %p443_p12 = pneg %p442_p4  ;;  %p449_p8 = por %p448_p5, %p447_p11 }
  0x2a   : > { %p450_p9 = pnand %p449_p8, %p443_p12 }
  0x2c   : > { %453 = shalt.err (!%p450_p9)
}
  0x2d   : > { %372 = dma.hbm_to_vmem [thread:$0]  (!%p648_p13), %s642_s28, 128, %s652_s30, %s118_s4  }
  0x2e   : > { %p798_p0 = scmp.lt.s32.totalorder %s554_s12, 3  ;;  %p799_p1 = scmp.ge.s32.totalorder %s554_s12, 1 }
  0x2f   : > { %s695_s7 = scalar_lea.hbm %s789_s1, %s350_s24  ;;  %s139_s8 = scalar_lea.vmem [#allocation5], %s349_s25 }
  0x30   : > { %p686_p7 = pnand %p799_p1, %p798_p0  ;;  %s146_s14 = sshll.u32 %s139_s8, 4  ;;  %s147_s14 = int_to_ptr.vmem [resolvable:$true] %s146_s14 }
  0x31   : > { %s136_s28 = scalar_lea.sflag [#allocation6], %s633_s23  ;;  %s454_s30 = scalar_lea.hbm %s695_s7, 128 }
  0x32   : > { %s800_s29 = scalar_select %p686_p7, 1, 0 }
  0x33   : > { %p455_p11 = scmp.ne.s32.totalorder %s695_s7, %s454_s30  ;;  %s459_s24 = scalar_lea.hbm %s789_s1, 256 }
  0x34   : > { %p460_p2 = scmp.lt.u32.totalorder %s695_s7, %s789_s1  ;;  %p461_p4 = scmp.lt.u32.totalorder %s459_s24, %s454_s30 }
  0x35   : > { %p457_p12 = pnand %p455_p11, %p426_p3  ;;  %p463_p8 = scmp.lt.u32.totalorder %s454_s30, %s695_s7 }
  0x36   : > { %p462_p5 = por %p461_p4, %p460_p2 }
  0x37   : > { %p458_p10 = pneg %p457_p12 }
  0x38   : > { %p464_p9 = por %p463_p8, %p462_p5 }
  0x3a   : > { %p465_p0 = pnand %p464_p9, %p458_p10 }
  0x3c   : > { %468 = shalt.err (!%p465_p0)
}
  0x3d   : > { %s469_s23 = scalar_lea.vmem %s147_s14, 128  ;;  %s557_s25 = smov [#allocation5]  }
  0x3e   : > { %p470_p1 = scmp.ne.s32.totalorder %s147_s14, %s469_s23  ;;  %s474_s26 = sshll.u32 %s557_s25, 4  ;;  %s475_s26 = int_to_ptr.vmem [resolvable:$false] %s474_s26 }
  0x3f   : > { %s476_s27 = scalar_lea.vmem %s475_s26, 256  ;;  %p477_p6 = scmp.lt.s32.totalorder %s147_s14, %s475_s26 }
  0x40   : > { %p472_p11 = pnand %p470_p1, %p426_p3  ;;  %p478_p7 = scmp.lt.s32.totalorder %s476_s27, %s469_s23 }
  0x42   : > { %p473_p12 = pneg %p472_p11  ;;  %p479_p2 = por %p478_p7, %p477_p6 }
  0x44   : > { %p480_p4 = pnand %p479_p2, %p473_p12 }
  0x46   : > { %483 = shalt.err (!%p480_p4)
}
  0x47   : > { %375 = dma.hbm_to_vmem [thread:$0]  (!%p648_p13), %s695_s7, 128, %s147_s14, %s136_s28  }
  0x48   : > { %p801_p10 = scmp.ne.s32.totalorder %s800_s29, 0 }
  0x49   : > { %s722_s5 = sand.u32 (!%p801_p10), 1, %s546_s10   ;;  %p802_p6 = scmp.ne.s32.totalorder (!%p801_p10), %s794_s20, 0 }
  0x4a   : > { %155 = sbr.rel (%p801_p10) target bundleno = 631 (0x277), region = 28  ;;  %s725_s6 = sshll.u32 (!%p801_p10), %s722_s5, 3 }
  0x4b   : > { %s158_s8 = scalar_lea.sflag (!%p801_p10), [#allocation3], %s722_s5  ;;  %s161_s30 = scalar_lea.vmem (!%p801_p10), [#allocation2], %s725_s6 }
  0x51   : > { %529 = dma.done.wait (%p802_p6), %s158_s8, 128  }
  0x52   : > { %531 = vsyncadd (%p802_p6), %s158_s8, 4294967168  ;;  %s167_s3 = scalar_lea.sflag [#allocation6], %s722_s5  ;;  %s170_s29 = scalar_lea.vmem [#allocation5], %s725_s6 }
  0x53   : > { %533 = dma.done.wait (%p802_p6), %s167_s3, 128  }
  0x54   : > { %535 = vsyncadd (%p802_p6), %s167_s3, 4294967168  ;;  %v196_v0 = vld [vmem:[%s161_s30] sm:$0xff]  ;;  %v198_v1 = vld [vmem:[%s170_s29] sm:$0xff]  ;;  %vm226_vm0 = vcmask 7168   ;;  %s195_s20 = scalar_lea.vmem [#allocation7], %s725_s6  ;;  %s358_s14 = sshll.u32 %s595_s13, 7 }
  0x55   : > { %v197_v2 = vmul.f32 0.25, %v196_v0  ;;  %v199_v3 = vmul.f32 0.25, %v198_v1  ;;  %s253_s7 = sshll.u32 %s195_s20, 4  ;;  %s746_s24 = scalar_lea.hbm %s790_s2, %s358_s14  ;;  %s741_s7 = int_to_ptr.vmem [resolvable:$true] %s253_s7 }
  0x56   : > { %s240_s17 = scalar_lea.sflag [#allocation4], %s722_s5  ;;  %s484_s19 = scalar_lea.vmem %s741_s7, 128 }
  0x57   : > { %200 = vmax.xlane.f32.xlu0 %v197_v2  ;;  %p485_p13 = scmp.ne.s32.totalorder %s741_s7, %s484_s19  ;;  %p803_p3 = scmp.ne.s32.totalorder %s795_s21, 0 }
  0x58   : > { %s558_s13 = smov [#allocation7]  }
  0x59   : > { %p486_p7 = pnand %p485_p13, %p803_p3  ;;  %s488_s23 = sshll.u32 %s558_s13, 4  ;;  %s489_s23 = int_to_ptr.vmem [resolvable:$false] %s488_s23 }
  0x5a   : > { %s490_s25 = scalar_lea.vmem %s489_s23, 256  ;;  %p491_p8 = scmp.lt.s32.totalorder %s741_s7, %s489_s23 }
  0x5b   : > { %203 = vmax.xlane.f32.xlu0 %v199_v3  ;;  %p487_p5 = pneg %p486_p7  ;;  %p492_p9 = scmp.lt.s32.totalorder %s490_s25, %s484_s19 }
  0x5d   : > { %p493_p0 = por %p492_p9, %p491_p8 }
  0x5f   : > { %p494_p1 = pnand %p493_p0, %p487_p5 }
  0xe4   : > { %v201_v4 = vpop.xlane.xlu0 %200 }
  0xe5   : > { %v202_v6 = vsub.f32 %v197_v2, %v201_v4 }
  0xe7   : > { %v210_v9 = vmul.f32 1.442695, %v202_v6 }
  0xe8   : > { %v204_v5 = vpop.xlane.xlu0 %203 }
  0xe9   : > { %v205_v7 = vsub.f32 %v199_v3, %v204_v5 }
  0xeb   : > { %v206_v8 = vmul.f32 1.442695, %v205_v7  ;;  %v214_v10 = vsub.f32 %v205_v7, %v202_v6 }
  0xed   : > { %414 = vpow2.f32 %v206_v8 }
  0xee   : > { %416 = vpow2.f32 %v210_v9 }
  0xf7   : > { %v415_v11 = vpop.eup %414 }
  0xf8   : > { %208 = vadd.xlane.f32.xlu1 %v415_v11  ;;  %v215_v12 = vmul.f32 %v415_v11, %v214_v10  ;;  %v417_v13 = vpop.eup %416 }
  0xfa   : > { %216 = vadd.xlane.f32.xlu0 %v215_v12 }
  0xfc   : > { %212 = vadd.xlane.f32.xlu1 %v417_v13 }
 0x185   : > { %v209_v14 = vpop.xlane.xlu1 %208 }
 0x186   : > { %418 = vlog2.f32 %v209_v14 }
 0x187   : > { %420 = vrcp.f32 %v209_v14  ;;  %v217_v21 = vpop.xlane.xlu0 %216 }
 0x189   : > { %v213_v15 = vpop.xlane.xlu1 %212 }
 0x18a   : > { %422 = vlog2.f32 %v213_v15 }
 0x190   : > { %v419_v16 = vpop.eup %418 }
 0x191   : > { %v421_v17 = vpop.eup %420  ;;  %v221_v19 = vmul.f32 0.6931472, %v419_v16 }
 0x192   : > { %v219_v22 = vmul.f32 %v421_v17, %v217_v21 }
 0x194   : > { %v423_v18 = vpop.eup %422 }
 0x195   : > { %v223_v20 = vmul.f32 0.6931472, %v423_v18 }
 0x197   : > { %v224_v23 = vsub.f32 %v221_v19, %v223_v20 }
 0x199   : > { %v225_v24 = vsub.f32 %v219_v22, %v224_v23 }
 0x19b   : > { %v227_v25 = vsel %vm226_vm0, %v225_v24, 0.0 }
 0x19c   : > { %228 = vadd.xlane.f32.xlu1 %v227_v25 }
 0x229   : > { %v229_v26 = vpop.xlane.xlu1 %228 }
 0x22a   : > { %v230_v27 = vrot.slane %v229_v26, 4 }
 0x22c   : > { %v231_v28 = vadd.f32 %v230_v27, %v229_v26 }
 0x22e   : > { %v232_v29 = vrot.slane %v231_v28, 2 }
 0x230   : > { %v233_v30 = vadd.f32 %v232_v29, %v231_v28 }
 0x232   : > { %v234_v31 = vrot.slane %v233_v30, 1 }
 0x234   : > { %v235_v32 = vadd.f32 %v234_v31, %v233_v30 }
 0x236   : > { %361 = vpush %v235_v32 }
 0x267   : > { %s362_s28 = spop %361 }
 0x268   : > { %v237_v33 = vstv %s362_s28 }
 0x269   : > { %238 = vst [vmem:[%s195_s20] sm:$0xff] %v237_v33 }
 0x26a   : > { %497 = shalt.err (!%p494_p1)
}
 0x26b   : > { %s498_s26 = scalar_lea.hbm %s746_s24, 128  ;;  %s502_s6 = scalar_lea.hbm %s790_s2, 256 }
 0x26c   : > { %p499_p11 = scmp.ne.s32.totalorder %s746_s24, %s498_s26  ;;  %p503_p4 = scmp.lt.u32.totalorder %s746_s24, %s790_s2 }
 0x26d   : > { %p504_p10 = scmp.lt.u32.totalorder %s502_s6, %s498_s26  ;;  %p506_p13 = scmp.lt.u32.totalorder %s498_s26, %s746_s24 }
 0x26e   : > { %p500_p12 = pnand %p499_p11, %p803_p3 }
 0x26f   : > { %p505_p6 = por %p504_p10, %p503_p4 }
 0x270   : > { %p501_p2 = pneg %p500_p12 }
 0x271   : > { %p507_p7 = por %p506_p13, %p505_p6 }
 0x273   : > { %p508_p5 = pnand %p507_p7, %p501_p2 }
 0x275   : > { %511 = shalt.err (!%p508_p5)
}
 0x276   : > { %367 = dma.vmem_to_hbm [thread:$0]  (%p803_p3), %s741_s7, 128, %s746_s24, %s240_s17  }
 0x277 PF: > { %s265_s3 = sand.u32 1, %s542_s9   ;;  %p804_p8 = scmp.ne.s32.totalorder %s796_s22, 0 }
 0x278   : > { %p805_p9 = scmp.ge.s32.totalorder %s554_s12, 2  ;;  %s266_s29 = scalar_lea.sflag [#allocation4], %s265_s3 }
 0x27a   : > { %p377_p0 = pnand %p805_p9, %p804_p8 }
 0x27c   : > { %537 = dma.done.wait (!%p377_p0), %s266_s29, 128  }
 0x27d   : > { %539 = vsyncadd (!%p377_p0), %s266_s29, 4294967168  ;;  %p18_p1 = scmp.ge.s32.totalorder %s599_s15, 4   ;;  %s806_s9 = smov %s546_s10 }
 0x27e   : > { %s807_s10 = smov %s550_s11  ;;  %s808_s11 = smov %s611_s18 }
 0x27f   : > { %s809_s12 = smov %s599_s15  ;;  %20 = sbr.rel (!%p18_p1) target bundleno = 7 (0x7), region = 86 }
 0x286   :  { %271 = vsyncpa [#allocation3], 1 }
 0x287   :  { %273 = vsyncpa [#allocation3 + $0x1], 1 }
 0x288   :  { %274 = vsyncpa [#allocation6], 1 }
 0x289   :  { %276 = vsyncpa [#allocation6 + $0x1], 1 }
 0x28a   :  { %277 = vsyncpa [#allocation4], 1 }
 0x28b   :  { %279 = vsyncpa [#allocation4 + $0x1], 1 }

</bundles_post_ra>
